<compile_context>
chip_gen: v7x
topology: tpu7x:2x2x1
jax: 0.10.0
libtpu: 0.0.40
codegen_flags: <defaults>
</compile_context>

<pallas_src>
import jax
import jax.numpy as jnp
from jax.experimental import pallas as pl
from jax.experimental.pallas import tpu as pltpu

LN_EPS = 1e-5  # nn.LayerNorm default


def _round_up(x, m):
    return (x + m - 1) // m * m


def _cdiv(a, b):
    return -(-a // b)


def _pick_hidden_tile(H, desired, align=128):
    """Largest tile <= desired that divides H and is a multiple of `align`.
    Falls back to full H when no clean tile exists (ragged reduction blocks would
    accumulate garbage, so we never allow them)."""
    if H <= desired or H % align != 0:
        return H
    t = (desired // align) * align
    while t >= align:
        if H % t == 0:
            return t
        t -= align
    return H


def ffn_kernel(x_ref, w1_ref, b1_ref, w2_ref, b2_ref, gamma_ref, beta_ref,
               o_ref, acc_ref):
    """Grid: (row tiles ["parallel"], hidden tiles ["arbitrary"]).

    Per step: h = relu(x @ W1[:, hk] + b1[hk]);  acc += h @ W2[hk, :]
    Last hidden step: out = LayerNorm(x + acc + b2) * gamma + beta
    """
    k = pl.program_id(1)

    @pl.when(k == 0)
    def _():
        acc_ref[...] = jnp.zeros_like(acc_ref)

    xc = x_ref[...].astype(w1_ref.dtype)                     # cast once for the MXU
    # fc1 slice + ReLU (MXU, f32 accumulation); live intermediate is only (tm, tH)
    h = jnp.dot(xc, w1_ref[...], preferred_element_type=jnp.float32) + b1_ref[...]
    h = jnp.maximum(h, 0.0)
    # TODO(synk): nn.Dropout(0.1) is identity in eval mode; a training-mode variant
    # needs an in-kernel pltpu.prng_seed + pltpu.prng_random_bits mask here.

    # fc2 partial product accumulated in f32 (MXU)
    acc_ref[...] += jnp.dot(h.astype(w2_ref.dtype), w2_ref[...],
                            preferred_element_type=jnp.float32)

    @pl.when(k == pl.num_programs(1) - 1)
    def _():
        # residual + LayerNorm over the last (lane) dim, all in f32
        z = x_ref[...].astype(jnp.float32) + acc_ref[...] + b2_ref[...]
        mean = jnp.mean(z, axis=-1, keepdims=True)
        var = jnp.mean((z - mean) * (z - mean), axis=-1, keepdims=True)
        zn = (z - mean) * jax.lax.rsqrt(var + LN_EPS)
        o_ref[...] = (zn * gamma_ref[...] + beta_ref[...]).astype(o_ref.dtype)


def prepare_params(w1, b1, w2, b2, gamma, beta, compute_dtype=jnp.bfloat16):
    """One-time parameter prep (cast + reshape). Call at init, NOT per forward call,
    so repeated inference does not pay the weight-cast HBM round trip."""
    return (w1.astype(compute_dtype),
            b1.reshape(1, -1).astype(jnp.float32),
            w2.astype(compute_dtype),
            b2.reshape(1, -1).astype(jnp.float32),
            gamma.reshape(1, -1).astype(jnp.float32),
            beta.reshape(1, -1).astype(jnp.float32))


def feedforward(x, params, *, tile_rows=256, hidden_tile=512):
    """x: (B, S, D), params from prepare_params(). Returns (B, S, D) in x.dtype.

    tile_rows:   rows of x per grid step (multiple of 8; 256 default suits v6e/v7x MXU,
                 also a multiple of 128 for v5e).
    hidden_tile: hidden-dim slice per reduction step (multiple of 128; bounds the live
                 f32 intermediate and the resident weight slices in VMEM).
    """
    w1, b1, w2, b2, gamma, beta = params
    B, S, D = x.shape
    H = w1.shape[1]
    N = B * S
    x2 = x.reshape(N, D)

    # --- row tiling (no padding: ragged last block handled by Pallas) ---
    tile_rows = max(8, _round_up(tile_rows, 8))
    if N % 8 == 0:
        tm = min(tile_rows, N)
        # keep >= 2 row blocks when possible so both TensorCores get work
        if _cdiv(N, tm) < 2 and N > 8:
            tm = _round_up(_cdiv(N, 2), 8)
    else:
        # non-sublane-aligned N: ragged last block (tm multiple of 8) or one full block
        tm = tile_rows if N > tile_rows else N
    n_rows = _cdiv(N, tm)

    # --- hidden tiling (must divide H exactly: it is a reduction axis) ---
    tH = _pick_hidden_tile(H, hidden_tile)
    n_h = H // tH

    # --- VMEM budget (generation-aware cap) ---
    x_item = x.dtype.itemsize
    w_item = w1.dtype.itemsize
    est = (2 * tm * D * x_item            # x tile (double-buffered)
           + 2 * tm * D * x_item          # out tile (double-buffered)
           + 2 * D * tH * w_item          # W1 slice (double-buffered)
           + 2 * tH * D * w_item          # W2 slice (double-buffered)
           + 2 * tH * 4 + 3 * D * 4       # b1 slice, b2/gamma/beta
           + tm * D * 4                   # f32 accumulator scratch
           + tm * tH * 4)                 # live fc1 intermediate
    try:
        phys_vmem = pltpu.get_tpu_info().vmem_capacity_bytes
    except Exception:
        phys_vmem = 64 * 2**20            # conservative (v7x per-TC)
    cap = max(32 * 2**20, phys_vmem - 12 * 2**20)
    vmem_limit = int(min(cap, max(32 * 2**20, 2 * est)))

    cost = pl.CostEstimate(
        flops=4 * N * D * H,                                   # two matmuls
        bytes_accessed=2 * N * D * x_item + 2 * D * H * w_item,
        transcendentals=N,                                     # one rsqrt per row
    )

    resident = pl.Buffered(buffer_count=1)  # constant-index operands: no double-buffer

    grid_spec = pltpu.PrefetchScalarGridSpec(
        num_scalar_prefetch=0,
        grid=(n_rows, n_h),
        in_specs=[
            pl.BlockSpec((tm, D), lambda i, k: (i, 0)),                         # x rows
            pl.BlockSpec((D, tH), lambda i, k: (0, k)),                         # W1 slice
            pl.BlockSpec((1, tH), lambda i, k: (0, k)),                         # b1 slice
            pl.BlockSpec((tH, D), lambda i, k: (k, 0)),                         # W2 slice
            pl.BlockSpec((1, D), lambda i, k: (0, 0), pipeline_mode=resident),  # b2
            pl.BlockSpec((1, D), lambda i, k: (0, 0), pipeline_mode=resident),  # gamma
            pl.BlockSpec((1, D), lambda i, k: (0, 0), pipeline_mode=resident),  # beta
        ],
        out_specs=pl.BlockSpec((tm, D), lambda i, k: (i, 0)),
        scratch_shapes=[pltpu.VMEM((tm, D), jnp.float32)],
    )

    out = pl.pallas_call(
        ffn_kernel,
        out_shape=jax.ShapeDtypeStruct((N, D), x.dtype),
        grid_spec=grid_spec,
        compiler_params=pltpu.CompilerParams(
            dimension_semantics=("parallel", "arbitrary"),
            vmem_limit_bytes=vmem_limit),
        cost_estimate=cost,
    )(x2, w1, b1, w2, b2, gamma, beta)

    return out.reshape(B, S, D)


def init_params(key, dim, hidden_dim):
    """Deterministic xavier-uniform-like init (matches nn.Linear / nn.LayerNorm shapes)."""
    k1, k2 = jax.random.split(key)
    lim = (6.0 / (dim + hidden_dim)) ** 0.5
    # torch fc1.weight is (hidden, dim); stored transposed (dim, hidden) for x @ W1.
    w1 = jax.random.uniform(k1, (dim, hidden_dim), jnp.float32, -lim, lim)
    b1 = jnp.zeros((hidden_dim,), jnp.float32)
    w2 = jax.random.uniform(k2, (hidden_dim, dim), jnp.float32, -lim, lim)
    b2 = jnp.zeros((dim,), jnp.float32)
    gamma = jnp.ones((dim,), jnp.float32)
    beta = jnp.zeros((dim,), jnp.float32)
    return w1, b1, w2, b2, gamma, beta


if __name__ == "__main__":
    B, S, D, H = 2, 8, 32, 64
    key = jax.random.PRNGKey(0)
    kx, kp = jax.random.split(key)
    x = jax.random.normal(kx, (B, S, D), jnp.float32)
    w1, b1, w2, b2, gamma, beta = init_params(kp, D, H)

    # plain-JAX f32 reference
    h = jnp.maximum(x @ w1 + b1, 0.0)
    y = h @ w2 + b2
    z = x + y
    mu = z.mean(-1, keepdims=True)
    var = ((z - mu) ** 2).mean(-1, keepdims=True)
    ref = (z - mu) / jnp.sqrt(var + LN_EPS) * gamma + beta

    # exact path: f32 MXU inputs, tight tolerance
    params_f32 = prepare_params(w1, b1, w2, b2, gamma, beta, compute_dtype=jnp.float32)
    out_f32 = jax.block_until_ready(feedforward(x, params_f32))
    assert jnp.allclose(out_f32, ref, atol=1e-5, rtol=1e-5), "f32 mismatch vs reference"

    # fast path: bf16 MXU inputs with f32 accumulation (weights pre-cast ONCE at init)
    params_bf16 = prepare_params(w1, b1, w2, b2, gamma, beta, compute_dtype=jnp.bfloat16)
    out_bf16 = jax.block_until_ready(feedforward(x, params_bf16))
    assert jnp.allclose(out_bf16, ref, atol=5e-2, rtol=5e-2), "bf16 mismatch vs reference"

    print("KERNEL_OK")
</pallas_src>

<mosaic_0001>
module attributes {stable_mosaic.version = 11 : i64} {
  func.func @ffn_kernel(%arg0: i32, %arg1: i32, %arg2: memref<8x32xf32, #tpu.memory_space<vmem>>, %arg3: memref<32x64xf32, #tpu.memory_space<vmem>>, %arg4: memref<1x64xf32, #tpu.memory_space<vmem>>, %arg5: memref<64x32xf32, #tpu.memory_space<vmem>>, %arg6: memref<1x32xf32, #tpu.memory_space<vmem>>, %arg7: memref<1x32xf32, #tpu.memory_space<vmem>>, %arg8: memref<1x32xf32, #tpu.memory_space<vmem>>, %arg9: memref<8x32xf32, #tpu.memory_space<vmem>>, %arg10: memref<8x32xf32, #tpu.memory_space<vmem>>) attributes {dimension_semantics = [#tpu.dimension_semantics<parallel>, #tpu.dimension_semantics<arbitrary>], iteration_bounds = array<i64: 2, 1>, scalar_prefetch = 0 : i64, scratch_operands = 1 : i64, tpu.core_type = #tpu.core_type<tc>, window_params = [{transform_indices = @transform_0, window_bounds = array<i64: 8, 32>}, {transform_indices = @transform_1, window_bounds = array<i64: 32, 64>}, {transform_indices = @transform_2, window_bounds = array<i64: 1, 64>}, {transform_indices = @transform_3, window_bounds = array<i64: 64, 32>}, {pipeline_mode = #tpu.pipeline_mode<synchronous>, transform_indices = @transform_4, window_bounds = array<i64: 1, 32>}, {pipeline_mode = #tpu.pipeline_mode<synchronous>, transform_indices = @transform_5, window_bounds = array<i64: 1, 32>}, {pipeline_mode = #tpu.pipeline_mode<synchronous>, transform_indices = @transform_6, window_bounds = array<i64: 1, 32>}, {transform_indices = @transform_7, window_bounds = array<i64: 8, 32>}]} {
    %c0_i32 = arith.constant 0 : i32
    %0 = arith.cmpi eq, %arg1, %c0_i32 : i32
    %1 = arith.extui %0 : i1 to i32
    %c0_i32_0 = arith.constant 0 : i32
    %2 = arith.cmpi ne, %1, %c0_i32_0 : i32
    scf.if %2 {
      %cst_16 = arith.constant 0.000000e+00 : f32
      %19 = vector.broadcast %cst_16 : f32 to vector<8x32xf32>
      %c0_17 = arith.constant 0 : index
      %c0_18 = arith.constant 0 : index
      %20 = vector.load %arg10[%c0_17, %c0_18] : memref<8x32xf32, #tpu.memory_space<vmem>>, vector<8x32xf32>
      tpu.vector_store %arg10[%c0_17, %c0_18], %19 {strides = array<i32>} : memref<8x32xf32, #tpu.memory_space<vmem>>, vector<8x32xf32>,
    } else {
    }
    %c0 = arith.constant 0 : index
    %c0_1 = arith.constant 0 : index
    %3 = vector.load %arg2[%c0, %c0_1] : memref<8x32xf32, #tpu.memory_space<vmem>>, vector<8x32xf32>
    %c0_2 = arith.constant 0 : index
    %c0_3 = arith.constant 0 : index
    %4 = vector.load %arg3[%c0_2, %c0_3] : memref<32x64xf32, #tpu.memory_space<vmem>>, vector<32x64xf32>
    %cst = arith.constant dense<0.000000e+00> : vector<8x64xf32>
    %5 = tpu.matmul %3, %4, %cst {dimension_numbers = #tpu.dot_dimension_numbers<[1], [0], [0], [1], [0, 0, 1, 1], [], []>} : vector<8x32xf32>, vector<32x64xf32>, vector<8x64xf32> -> vector<8x64xf32>
    %c0_4 = arith.constant 0 : index
    %c0_5 = arith.constant 0 : index
    %6 = vector.load %arg4[%c0_4, %c0_5] : memref<1x64xf32, #tpu.memory_space<vmem>>, vector<1x64xf32>
    %7 = vector.broadcast %6 : vector<1x64xf32> to vector<8x64xf32>
    %8 = arith.addf %5, %7 : vector<8x64xf32>
    %cst_6 = arith.constant 0.000000e+00 : f32
    %9 = vector.broadcast %cst_6 : f32 to vector<8x64xf32>
    %10 = arith.maximumf %8, %9 : vector<8x64xf32>
    %c0_7 = arith.constant 0 : index
    %c0_8 = arith.constant 0 : index
    %11 = vector.load %arg10[%c0_7, %c0_8] : memref<8x32xf32, #tpu.memory_space<vmem>>, vector<8x32xf32>
    %c0_9 = arith.constant 0 : index
    %c0_10 = arith.constant 0 : index
    %12 = vector.load %arg5[%c0_9, %c0_10] : memref<64x32xf32, #tpu.memory_space<vmem>>, vector<64x32xf32>
    %cst_11 = arith.constant dense<0.000000e+00> : vector<8x32xf32>
    %13 = tpu.matmul %10, %12, %cst_11 {dimension_numbers = #tpu.dot_dimension_numbers<[1], [0], [0], [1], [0, 0, 1, 1], [], []>} : vector<8x64xf32>, vector<64x32xf32>, vector<8x32xf32> -> vector<8x32xf32>
    %14 = arith.addf %11, %13 : vector<8x32xf32>
    %c0_12 = arith.constant 0 : index
    %c0_13 = arith.constant 0 : index
    %15 = vector.load %arg10[%c0_12, %c0_13] : memref<8x32xf32, #tpu.memory_space<vmem>>, vector<8x32xf32>
    tpu.vector_store %arg10[%c0_12, %c0_13], %14 {strides = array<i32>} : memref<8x32xf32, #tpu.memory_space<vmem>>, vector<8x32xf32>,
    %c0_i32_14 = arith.constant 0 : i32
    %16 = arith.cmpi eq, %arg1, %c0_i32_14 : i32
    %17 = arith.extui %16 : i1 to i32
    %c0_i32_15 = arith.constant 0 : i32
    %18 = arith.cmpi ne, %17, %c0_i32_15 : i32
    scf.if %18 {
      %c0_16 = arith.constant 0 : index
      %c0_17 = arith.constant 0 : index
      %19 = vector.load %arg2[%c0_16, %c0_17] : memref<8x32xf32, #tpu.memory_space<vmem>>, vector<8x32xf32>
      %c0_18 = arith.constant 0 : index
      %c0_19 = arith.constant 0 : index
      %20 = vector.load %arg10[%c0_18, %c0_19] : memref<8x32xf32, #tpu.memory_space<vmem>>, vector<8x32xf32>
      %21 = arith.addf %19, %20 : vector<8x32xf32>
      %c0_20 = arith.constant 0 : index
      %c0_21 = arith.constant 0 : index
      %22 = vector.load %arg6[%c0_20, %c0_21] : memref<1x32xf32, #tpu.memory_space<vmem>>, vector<1x32xf32>
      %23 = vector.broadcast %22 : vector<1x32xf32> to vector<8x32xf32>
      %24 = arith.addf %21, %23 : vector<8x32xf32>
      %cst_22 = arith.constant dense<0.000000e+00> : vector<8xf32>
      %25 = vector.multi_reduction <add>, %24, %cst_22 [1] : vector<8x32xf32> to vector<8xf32>
      %26 = vector.shape_cast %25 : vector<8xf32> to vector<8x1xf32>
      %cst_23 = arith.constant 3.200000e+01 : f32
      %27 = vector.broadcast %cst_23 : f32 to vector<8x1xf32>
      %28 = arith.divf %26, %27 : vector<8x1xf32>
      %29 = vector.broadcast %28 : vector<8x1xf32> to vector<8x32xf32>
      %30 = arith.subf %24, %29 : vector<8x32xf32>
      %31 = vector.broadcast %28 : vector<8x1xf32> to vector<8x32xf32>
      %32 = arith.subf %24, %31 : vector<8x32xf32>
      %33 = arith.mulf %30, %32 : vector<8x32xf32>
      %cst_24 = arith.constant dense<0.000000e+00> : vector<8xf32>
      %34 = vector.multi_reduction <add>, %33, %cst_24 [1] : vector<8x32xf32> to vector<8xf32>
      %35 = vector.shape_cast %34 : vector<8xf32> to vector<8x1xf32>
      %cst_25 = arith.constant 3.200000e+01 : f32
      %36 = vector.broadcast %cst_25 : f32 to vector<8x1xf32>
      %37 = arith.divf %35, %36 : vector<8x1xf32>
      %38 = vector.broadcast %28 : vector<8x1xf32> to vector<8x32xf32>
      %39 = arith.subf %24, %38 : vector<8x32xf32>
      %cst_26 = arith.constant 9.99999974E-6 : f32
      %40 = vector.broadcast %cst_26 : f32 to vector<8x1xf32>
      %41 = arith.addf %37, %40 : vector<8x1xf32>
      %42 = math.rsqrt %41 : vector<8x1xf32>
      %43 = vector.broadcast %42 : vector<8x1xf32> to vector<8x32xf32>
      %44 = arith.mulf %39, %43 : vector<8x32xf32>
      %c0_27 = arith.constant 0 : index
      %c0_28 = arith.constant 0 : index
      %45 = vector.load %arg7[%c0_27, %c0_28] : memref<1x32xf32, #tpu.memory_space<vmem>>, vector<1x32xf32>
      %46 = vector.broadcast %45 : vector<1x32xf32> to vector<8x32xf32>
      %47 = arith.mulf %44, %46 : vector<8x32xf32>
      %c0_29 = arith.constant 0 : index
      %c0_30 = arith.constant 0 : index
      %48 = vector.load %arg8[%c0_29, %c0_30] : memref<1x32xf32, #tpu.memory_space<vmem>>, vector<1x32xf32>
      %49 = vector.broadcast %48 : vector<1x32xf32> to vector<8x32xf32>
      %50 = arith.addf %47, %49 : vector<8x32xf32>
      %c0_31 = arith.constant 0 : index
      %c0_32 = arith.constant 0 : index
      %51 = vector.load %arg9[%c0_31, %c0_32] : memref<8x32xf32, #tpu.memory_space<vmem>>, vector<8x32xf32>
      tpu.vector_store %arg9[%c0_31, %c0_32], %50 {strides = array<i32>} : memref<8x32xf32, #tpu.memory_space<vmem>>, vector<8x32xf32>,
    } else {
    }
    return
  }
  func.func @transform_0(%arg0: i32, %arg1: i32) -> (i32, i32) {
    %c0_i32 = arith.constant 0 : i32
    %c0_i32_0 = arith.constant 0 : i32
    return %arg0, %c0_i32 : i32, i32
  }
  func.func @transform_1(%arg0: i32, %arg1: i32) -> (i32, i32) {
    %c0_i32 = arith.constant 0 : i32
    %c0_i32_0 = arith.constant 0 : i32
    return %c0_i32, %arg1 : i32, i32
  }
  func.func @transform_2(%arg0: i32, %arg1: i32) -> (i32, i32) {
    %c0_i32 = arith.constant 0 : i32
    %c0_i32_0 = arith.constant 0 : i32
    return %c0_i32, %arg1 : i32, i32
  }
  func.func @transform_3(%arg0: i32, %arg1: i32) -> (i32, i32) {
    %c0_i32 = arith.constant 0 : i32
    %c0_i32_0 = arith.constant 0 : i32
    return %arg1, %c0_i32 : i32, i32
  }
  func.func @transform_4(%arg0: i32, %arg1: i32) -> (i32, i32) {
    %c0_i32 = arith.constant 0 : i32
    %c0_i32_0 = arith.constant 0 : i32
    %c0_i32_1 = arith.constant 0 : i32
    return %c0_i32, %c0_i32_0 : i32, i32
  }
  func.func @transform_5(%arg0: i32, %arg1: i32) -> (i32, i32) {
    %c0_i32 = arith.constant 0 : i32
    %c0_i32_0 = arith.constant 0 : i32
    %c0_i32_1 = arith.constant 0 : i32
    return %c0_i32, %c0_i32_0 : i32, i32
  }
  func.func @transform_6(%arg0: i32, %arg1: i32) -> (i32, i32) {
    %c0_i32 = arith.constant 0 : i32
    %c0_i32_0 = arith.constant 0 : i32
    %c0_i32_1 = arith.constant 0 : i32
    return %c0_i32, %c0_i32_0 : i32, i32
  }
  func.func @transform_7(%arg0: i32, %arg1: i32) -> (i32, i32) {
    %c0_i32 = arith.constant 0 : i32
    %c0_i32_0 = arith.constant 0 : i32
    return %arg0, %c0_i32 : i32, i32
  }
}

</mosaic_0001>

<bundles_post_ra>
// kernel: tpu_custom_call.1
= control target key start
LH: loop header
LB: loop body
LE: loop exit
PB: predicated region body
PF: predicated region fallthrough
CT: control target
= control target key end

     0   :  { %12 = vsyncpa [#allocation4], 0  ;;  %s1117_s0 = inlined_call_operand.vmem [shape: f32[16,32], index: 0, kind: input, shape index: {}]   ;;  %s1118_s1 = inlined_call_operand.vmem [shape: f32[32,64], index: 1, kind: input, shape index: {}]   ;;  %s1119_s2 = inlined_call_operand.vmem [shape: f32[1,64], index: 2, kind: input, shape index: {}]   ;;  %s1120_s3 = inlined_call_operand.vmem [shape: f32[64,32], index: 3, kind: input, shape index: {}]   ;;  %s1121_s4 = inlined_call_operand.vmem [shape: f32[1,32], index: 4, kind: input, shape index: {}]   ;;  %s1122_s5 = inlined_call_operand.vmem [shape: f32[1,32], index: 5, kind: input, shape index: {}]   ;;  %s1123_s6 = inlined_call_operand.vmem [shape: f32[1,32], index: 6, kind: input, shape index: {}]   ;;  %s1124_s7 = inlined_call_operand.hbm [shape: f32[16,32], index: 7, kind: output, shape index: {}]  }
   0x1   :  { %14 = vsyncpa [#allocation4 + $0x1], 0  ;;  %s951_s24 = smov 0   ;;  %s953_s25 = smov 0  }
   0x2   :  { %s955_s26 = smov 0   ;;  %s957_s27 = smov 0  }
   0x3   :  { %s959_s28 = smov 0   ;;  %s961_s29 = smov 0  }
   0x4 LB: > { %s685_s30 = sadd.s32 4294967295, %s905_s29   ;;  %s686_s8 = sadd.s32 4294967294, %s905_s29   ;;  %s905_s29 = sphi %s961_s29, %s20_s29   ;;  %s901_s28 = sphi %s959_s28, %s1131_s28   ;;  %s897_s27 = sphi %s957_s27, %s1130_s27   ;;  %s893_s26 = sphi %s955_s26, %s1129_s26   ;;  %s889_s25 = sphi %s953_s25, %s1128_s25   ;;  %s885_s24 = sphi %s951_s24, %s1127_s24  }
   0x5   : > { %s32_s9 = sadd.s32 1, %s901_s28  ;;  %s206_s10 = sadd.s32 1, %s893_s26 }
   0x6   : > { %p34_p0 = scmp.ge.s32.totalorder %s32_s9, 2  ;;  %p216_p1 = scmp.ne.s32.totalorder %s893_s26, %s889_s25 }
   0x7   : > { %p217_p2 = scmp.eq.s32.totalorder %s685_s30, 1  ;;  %p222_p3 = scmp.ne.s32.totalorder %s889_s25, %s885_s24 }
   0x8   : > { %s1133_s9 = smov (%p34_p0, %s32_s9), 0  ;;  %p223_p5 = scmp.eq.s32.totalorder %s686_s8, 1 }
   0x9   : > { %p991_p4 = por %p217_p2, %p216_p1  ;;  %s203_s12 = ssub.s32 %s901_s28, %s1133_s9 }
   0xa   : > { %p692_p6 = scmp.ge.s32.totalorder %s905_s29, 1  ;;  %p204_p7 = scmp.eq.s32.totalorder %s203_s12, 0 }
   0xb   : > { %p998_p8 = por %p223_p5, %p222_p3  ;;  %p279_p9 = scmp.lt.s32.totalorder %s905_s29, 3 }
   0xc   : > { %s1004_s14 = scalar_select %p204_p7, %s893_s26, %s206_s10  }
   0xd   : > { %p280_p10 = pnand %p692_p6, %p279_p9 }
   0xe   : > { %v346_v0 = vld [vmem:[%s1118_s1] sm:$0xff] (!%p280_p10)  ;;  %v347_v1 = vld [vmem:[%s1118_s1 + $0x8] sm:$0xff] (!%p280_p10)  ;;  %v348_v2 = vld [vmem:[%s1118_s1 + $0x10] sm:$0xff] (!%p280_p10)  ;;  %vm343_vm0 = vcmask (!%p280_p10), 261120   ;;  %v907_v3 = vmov (!%p280_p10), 0.0|0.0   ;;  %v908_v6 = vmov (!%p280_p10), 0.0  }
   0xf   : > { %283 = sbr.rel (%p280_p10) target bundleno = 796 (0x31c), region = 48  ;;  %749 = vmatprep.subr.bf16.mxu0 (!%p280_p10), %v907_v3  ;;  %v750_v4 = vpack.c.bf16 (!%p280_p10), %v347_v1, %v346_v0  ;;  %v349_v5 = vld [vmem:[%s1118_s1 + $0x18] sm:$0xff] (!%p280_p10)  ;;  %344 = vst.msk [vmem:[#allocation2] sm:$0xff] (!%p280_p10), %vm343_vm0, %v908_v6  ;;  %p322_p11 = scmp.lt.s32.totalorder (!%p280_p10), %s897_s27, 1  ;;  %755 = vmatprep.subr.bf16.mxu1 (!%p280_p10), %v907_v3  ;;  %v433_v7 = vld [vmem:[%s1120_s3] sm:$0xff] (!%p280_p10)  ;;  %v434_v8 = vld [vmem:[%s1120_s3 + $0x8] sm:$0xff] (!%p280_p10) }
  0x10   : > { %vm909_vm1 = vmmov (!%p280_p10), 0   ;;  %v756_v9 = vpack.c.bf16 (!%p280_p10), %v434_v8, %v433_v7  ;;  %v435_v10 = vld [vmem:[%s1120_s3 + $0x10] sm:$0xff] (!%p280_p10)  ;;  %v436_v11 = vld [vmem:[%s1120_s3 + $0x18] sm:$0xff] (!%p280_p10)  ;;  %v753_v12 = vpack.c.bf16 (!%p280_p10), %v349_v5, %v348_v2  ;;  %v437_v14 = vld [vmem:[%s1120_s3 + $0x20] sm:$0xff] (!%p280_p10)  ;;  %vm441_vm2 = vcmask (!%p280_p10), 523264   ;;  %s319_s22 = sand.u32 (!%p280_p10), 1, %s889_s25  }
  0x11   : > { %727 = vmatprep.mubr.msk.f32.mxu0 (!%p280_p10), %vm909_vm1, %v908_v6  ;;  %746 = vmatprep.mubr.msk.f32.mxu1 (!%p280_p10), %vm909_vm1, %v908_v6  ;;  %v759_v13 = vpack.c.bf16 (!%p280_p10), %v436_v11, %v435_v10  ;;  %v438_v15 = vld [vmem:[%s1120_s3 + $0x28] sm:$0xff] (!%p280_p10)  ;;  %v439_v18 = vld [vmem:[%s1120_s3 + $0x30] sm:$0xff] (!%p280_p10)  ;;  %v440_v19 = vld [vmem:[%s1120_s3 + $0x38] sm:$0xff] (!%p280_p10)  ;;  %s693_s23 = sshll.u32 (!%p280_p10), %s319_s22, 3  ;;  %s702_s15 = sshll.u32 (!%p280_p10), %s897_s27, 7 }
  0x12   : > { %751 = vmatpush3.bf16.msra.mxu0 (!%p280_p10), %v750_v4  ;;  %757 = vmatpush3.bf16.msra.mxu1 (!%p280_p10), %v756_v9  ;;  %v762_v17 = vpack.c.bf16 (!%p280_p10), %v438_v15, %v437_v14  ;;  %v765_v20 = vpack.c.bf16 (!%p280_p10), %v440_v19, %v439_v18  ;;  %v695_v21 = vld [vmem:[%s1119_s2] ss:$0 sm:$0xff] (!%p280_p10)  ;;  %s321_s16 = scalar_lea.vmem (!%p280_p10), [#allocation3], %s693_s23  ;;  %s1069_s20 = scalar_lea.hbm (!%p280_p10), %s1124_s7, %s702_s15 }
  0x13   : > { %752 = vmatprep.subr.bf16.mxu0 (!%p280_p10), %v907_v3  ;;  %758 = vmatprep.subr.bf16.mxu1 (!%p280_p10), %v907_v3  ;;  %v698_v31 = vld [vmem:[%s1121_s4] ss:$0 sm:$0xff] (!%p280_p10)  ;;  %s576_s17 = sshll.u32 (!%p280_p10), %s321_s16, 4  ;;  %s563_s21 = scalar_lea.sflag (!%p280_p10), [#allocation4], %s319_s22  ;;  %s1071_s17 = int_to_ptr.vmem [resolvable:$true] %s576_s17 }
  0x14   : > { %v699_v44 = vld [vmem:[%s1122_s5] ss:$0 sm:$0xff] (!%p280_p10)  ;;  %s827_s30 = scalar_lea.vmem (!%p280_p10), %s1071_s17, 128 }
  0x15   : > { %v700_v46 = vld [vmem:[%s1123_s6] ss:$0 sm:$0xff] (!%p280_p10)  ;;  %p828_p12 = scmp.ne.s32.totalorder (!%p280_p10), %s1071_s17, %s827_s30 }
  0x16   : > { %s323_s18 = scalar_select %p322_p11, %s897_s27, 1  ;;  %754 = vmatpush3.bf16.msra.mxu0 %v753_v12  ;;  %760 = vmatpush3.bf16.msra.mxu1 %v759_v13  ;;  %v432_v26 = vld [vmem:[#allocation2] sm:$0xff] }
  0x17   : > { %761 = vmatprep.subr.bf16.mxu1 %v907_v3  ;;  %p829_p13 = pnand %p828_p12, %p991_p4  ;;  %s910_s27 = smov [#allocation3]  }
  0x18   : > { %s694_s19 = sshll.u32 %s323_s18, 3  ;;  %s831_s23 = sshll.u32 %s910_s27, 4  ;;  %s832_s23 = int_to_ptr.vmem [resolvable:$false] %s831_s23 }
  0x19   : > { %s325_s10 = scalar_lea.vmem %s1117_s0, %s694_s19  ;;  %p830_p0 = pneg %p829_p13 }
  0x1a   : > { %v345_v16 = vld [vmem:[%s325_s10] sm:$0xff]  ;;  %763 = vmatpush3.bf16.msra.mxu1 %v762_v17  ;;  %s833_s8 = scalar_lea.vmem %s832_s23, 256  ;;  %p834_p1 = scmp.lt.s32.totalorder %s1071_s17, %s832_s23 }
  0x1b   : > { %728 = vmatmul.mubr.msk.f32.vlgmr.msra.gmra.mrb[0].mxu0 %vm343_vm0, %v345_v16  ;;  %764 = vmatprep.subr.bf16.mxu1 %v907_v3  ;;  %p835_p2 = scmp.lt.s32.totalorder %s833_s8, %s827_s30 }
  0x1d   : > { %p836_p3 = por %p835_p2, %p834_p1 }
  0x1e   : > { %766 = vmatpush3.bf16.msra.mxu1 %v765_v20 }
  0x1f   : > { %p837_p5 = pnand %p836_p3, %p830_p0 }
  0xee   : > { %v427_v22 = vpop.f32.mrb[0].mxu0 }
  0xef   : > { %v428_v23 = vadd.f32 %v695_v21, %v427_v22  ;;  %v729_v24 = vpop.f32.mrb[1].mxu0 }
  0xf1   : > { %v431_v25 = vmax.f32 %v428_v23, 0.0 }
  0xf3   : > { %747 = vmatmul.mubr.msk.f32.vlgmr.msra.gmra.mrb[0].mxu1 %vm441_vm2, %v431_v25 }
 0x1c6   : > { %v511_v27 = vpop.f32.mrb[0].mxu1 }
 0x1c7   : > { %v515_v28 = vadd.f32 %v511_v27, %v432_v26  ;;  %v748_v29 = vpop.f32.mrb[1].mxu1 }
 0x1c9   : > { %516 = vst.msk [vmem:[#allocation2] sm:$0xff] %vm343_vm0, %v515_v28 }
 0x1d0   : > { %v521_v30 = vld [vmem:[#allocation2] sm:$0xff] }
 0x1d1   : > { %v522_v32 = vadd.f32 %v521_v30, %v345_v16 }
 0x1d3   : > { %v530_v33 = vadd.f32 %v698_v31, %v522_v32 }
 0x1d5   : > { %v531_v34 = vsel %vm343_vm0, %v530_v33, 0.0 }
 0x1d6   : > { %532 = vadd.xlane.f32.xlu0 %v531_v34 }
 0x263   : > { %v533_v35 = vpop.xlane.xlu0 %532 }
 0x264   : > { %v535_v36 = vmul.f32 0.03125, %v533_v35 }
 0x266   : > { %v536_v37 = vsub.f32 %v530_v33, %v535_v36 }
 0x268   : > { %v537_v38 = vmul.f32 %v536_v37, %v536_v37 }
 0x26a   : > { %v538_v39 = vsel %vm343_vm0, %v537_v38, 0.0 }
 0x26b   : > { %539 = vadd.xlane.f32.xlu0 %v538_v39 }
 0x2f8   : > { %v540_v40 = vpop.xlane.xlu0 %539 }
 0x2f9   : > { %v541_v41 = vmul.f32 0.03125, %v540_v40 }
 0x2fb   : > { %v542_v42 = vadd.f32 1e-05, %v541_v41 }
 0x2fd   : > { %825 = vrsqrt.f32 %v542_v42 }
 0x307   : > { %v826_v43 = vpop.eup %825 }
 0x308   : > { %v544_v45 = vmul.f32 %v826_v43, %v536_v37 }
 0x30a   : > { %v552_v47 = vmul.f32 %v699_v44, %v544_v45 }
 0x30c   : > { %v560_v48 = vadd.f32 %v700_v46, %v552_v47 }
 0x30e   : > { %561 = vst.msk [vmem:[%s321_s16] sm:$0xff] %vm343_vm0, %v560_v48 }
 0x30f   : > { %840 = shalt.err (!%p837_p5)
}
 0x310   : > { %s841_s22 = scalar_lea.hbm %s1069_s20, 128  ;;  %s845_s15 = scalar_lea.hbm %s1124_s7, 256 }
 0x311   : > { %p842_p6 = scmp.ne.s32.totalorder %s1069_s20, %s841_s22  ;;  %p846_p10 = scmp.lt.u32.totalorder %s1069_s20, %s1124_s7 }
 0x312   : > { %p847_p11 = scmp.lt.u32.totalorder %s845_s15, %s841_s22  ;;  %p849_p13 = scmp.lt.u32.totalorder %s841_s22, %s1069_s20 }
 0x313   : > { %p843_p7 = pnand %p842_p6, %p991_p4 }
 0x314   : > { %p848_p12 = por %p847_p11, %p846_p10 }
 0x315   : > { %p844_p9 = pneg %p843_p7 }
 0x316   : > { %p850_p0 = por %p849_p13, %p848_p12 }
 0x318   : > { %p851_p1 = pnand %p850_p0, %p844_p9 }
 0x31a   : > { %854 = shalt.err (!%p851_p1)
}
 0x31b   : > { %767 = dma.vmem_to_hbm [thread:$0]  (%p991_p4), %s1071_s17, 128, %s1069_s20, %s563_s21  }
 0x31c PF: > { %p773_p2 = scmp.ge.s32.totalorder %s905_s29, 2  ;;  %s588_s19 = sand.u32 1, %s885_s24  }
 0x31d   : > { %s589_s30 = scalar_lea.sflag [#allocation4], %s588_s19 }
 0x31e   : > { %p770_p3 = pnand %p773_p2, %p998_p8 }
 0x320   : > { %880 = dma.done.wait (!%p770_p3), %s589_s30, 128  }
 0x321   : > { %882 = vsyncadd (!%p770_p3), %s589_s30, 4294967168  ;;  %s20_s29 = sadd.s32 1, %s905_s29   ;;  %s1127_s24 = smov %s889_s25 }
 0x322   : > { %p17_p5 = scmp.ge.s32.totalorder %s20_s29, 4   ;;  %s1128_s25 = smov %s893_s26 }
 0x323   : > { %s1129_s26 = smov %s1004_s14  ;;  %s1130_s27 = smov %s901_s28 }
 0x324   : > { %s1131_s28 = smov %s1133_s9  ;;  %19 = sbr.rel (!%p17_p5) target bundleno = 4 (0x4), region = 100 }
 0x32b   :  { %594 = vsyncpa [#allocation4], 1 }
 0x32c   :  { %596 = vsyncpa [#allocation4 + $0x1], 1 }

</bundles_post_ra>
